<compile_context>
chip_gen: v6e
topology: v6e:2x2x1
jax: 0.10.0
libtpu: 0.0.40
codegen_flags: <defaults>
</compile_context>

<pallas_src>
import functools

import jax
import jax.numpy as jnp
from jax.experimental import pallas as pl
from jax.experimental.pallas import tpu as pltpu

_MIB = 1024 * 1024


def _vmem_capacity_bytes():
    """Physical VMEM per TensorCore; conservative fallback if query fails."""
    try:
        return int(pltpu.get_tpu_info().vmem_capacity_bytes)
    except Exception:
        return 64 * _MIB  # v7x per-TC VMEM (smallest current generation)


def _pick_hw_tile(c, hw, itemsize, target_bytes):
    """HW (lane) tile: full extent if small, else a 128-multiple sized so one
    (C, T) tile is ~target_bytes."""
    if hw <= 512:
        return hw
    t = target_bytes // max(1, c * itemsize)
    t = max(128, (t // 128) * 128)
    return hw if t >= hw else int(t)


# ----------------------------------------------------------------------------
# Fused resident-x kernel: one pass, reads x once, writes once.
# ----------------------------------------------------------------------------
def _fused_kernel(x_ref, w1_ref, b1_ref, w2_ref, b2_ref, o_ref, *, inv_hw):
    """x_ref: (1, C, HW); weights (Cr,C)/(Cr,1)/(C,Cr)/(C,1); o_ref: (1, C, HW)."""
    x = x_ref[0]                                            # (C, HW), native dtype
    xf = x.astype(jnp.float32)
    mx = jnp.max(xf, axis=-1, keepdims=True)                # (C, 1)
    av = jnp.sum(xf, axis=-1, keepdims=True) * inv_hw       # (C, 1) f32 accum
    p = jnp.concatenate([mx, av], axis=1)                   # (C, 2) [max | avg]
    h = jnp.dot(w1_ref[...], p,
                preferred_element_type=jnp.float32) + b1_ref[...]   # (Cr, 2)
    h = jnp.maximum(h, 0.0)                                  # ReLU
    y = jnp.dot(w2_ref[...], h,
                preferred_element_type=jnp.float32) + b2_ref[...]   # (C, 2)
    att = jax.nn.sigmoid(y[:, 0:1] + y[:, 1:2])              # (C, 1)
    scale = (1.0 + att).astype(x_ref.dtype)                  # keep multiply packed
    o_ref[0] = (x * scale).astype(o_ref.dtype)


# ----------------------------------------------------------------------------
# Streaming pass 1: pooled stats only (MLP hoisted to plain JAX).
# ----------------------------------------------------------------------------
def _pool_kernel(x_ref, stats_ref, max_sc, sum_sc, *, hw, tile_hw):
    """x_ref: (1, C, T). stats_ref: (1, C, 2) f32 = [max | avg].
    Ragged-tail masking only on the last tile."""
    t = pl.program_id(1)
    last = pl.num_programs(1) - 1

    @pl.when(t == 0)
    def _init():
        max_sc[...] = jnp.full_like(max_sc, -jnp.inf)
        sum_sc[...] = jnp.zeros_like(sum_sc)

    ragged = (hw % tile_hw) != 0  # static python bool

    def _accumulate(xf):
        max_sc[...] = jnp.maximum(max_sc[...],
                                  jnp.max(xf, axis=-1, keepdims=True))
        sum_sc[...] = sum_sc[...] + jnp.sum(xf, axis=-1, keepdims=True)

    if ragged:
        @pl.when(t != last)
        def _full_tile():
            _accumulate(x_ref[0].astype(jnp.float32))

        @pl.when(t == last)
        def _tail_tile():
            xf = x_ref[0].astype(jnp.float32)
            pos = t * tile_hw + jax.lax.broadcasted_iota(jnp.int32, xf.shape, 1)
            valid = pos < hw
            max_sc[...] = jnp.maximum(
                max_sc[...],
                jnp.max(jnp.where(valid, xf, -jnp.inf), axis=-1, keepdims=True))
            sum_sc[...] = sum_sc[...] + jnp.sum(
                jnp.where(valid, xf, 0.0), axis=-1, keepdims=True)
    else:
        _accumulate(x_ref[0].astype(jnp.float32))

    @pl.when(t == last)
    def _finalize():
        stats_ref[0] = jnp.concatenate(
            [max_sc[...], sum_sc[...] * (1.0 / hw)], axis=1
        ).astype(stats_ref.dtype)


# ----------------------------------------------------------------------------
# Streaming pass 2: out = x * scale (per-channel broadcast over lanes).
# ----------------------------------------------------------------------------
def _apply_kernel(x_ref, scale_ref, o_ref):
    s = scale_ref[0].astype(x_ref.dtype)   # stay in x's dtype (bf16 stays packed)
    o_ref[0] = (x_ref[0] * s).astype(o_ref.dtype)


@functools.partial(jax.jit, static_argnames=("r", "hw_tile"))
def cam_forward(x_nchw, w1_t, b1_t, w2_t, b2_t, *, r, hw_tile=None):
    """x_nchw: [B, C, H, W].
    w1_t: [C/r, C, 1, 1], b1_t: [C/r]  (PyTorch Conv2d layer-1 params)
    w2_t: [C, C/r, 1, 1], b2_t: [C]    (PyTorch Conv2d layer-2 params)
    hw_tile: optional HW tile override (multiple of 128 or == H*W); forces the
             two-pass streaming path.
    """
    B, C, H, W = x_nchw.shape
    Cr = C // r
    HW = H * W

    # Free reshape only (no transposes): [B, C, H, W] -> [B, C, HW].
    x = x_nchw.reshape(B, C, HW)
    w1 = w1_t.reshape(Cr, C)
    b1 = b1_t.reshape(Cr, 1)
    w2 = w2_t.reshape(C, Cr)
    b2 = b2_t.reshape(C, 1)

    itemsize = x_nchw.dtype.itemsize
    vmem_cap = _vmem_capacity_bytes()
    budget = int(0.80 * vmem_cap)          # stay well below physical VMEM

    # -------- Fused resident-x fast path -----------------------------------
    slab_bytes = C * HW * itemsize
    w_bytes = 4 * (Cr * C + Cr + C * Cr + C)
    # 2x in + 2x out double-buffers + one f32 working copy + 2x weights + slack.
    fused_need = 4 * slab_bytes + C * HW * 4 + 2 * w_bytes + 2 * _MIB

    if hw_tile is None and fused_need <= budget:
        vmem_limit = int(min(budget, max(16 * _MIB, fused_need + 2 * _MIB)))
        out = pl.pallas_call(
            functools.partial(_fused_kernel, inv_hw=1.0 / HW),
            out_shape=jax.ShapeDtypeStruct((B, C, HW), x.dtype),
            grid_spec=pltpu.PrefetchScalarGridSpec(
                num_scalar_prefetch=0,
                grid=(B,),
                in_specs=[
                    pl.BlockSpec((1, C, HW), lambda b: (b, 0, 0)),
                    pl.BlockSpec((Cr, C), lambda b: (0, 0)),
                    pl.BlockSpec((Cr, 1), lambda b: (0, 0)),
                    pl.BlockSpec((C, Cr), lambda b: (0, 0)),
                    pl.BlockSpec((C, 1), lambda b: (0, 0)),
                ],
                out_specs=pl.BlockSpec((1, C, HW), lambda b: (b, 0, 0)),
            ),
            compiler_params=pltpu.CompilerParams(
                dimension_semantics=("parallel",),
                vmem_limit_bytes=vmem_limit,
            ),
        )(x, w1, b1, w2, b2)
        return out.reshape(B, C, H, W)

    # -------- Two-pass streaming path ---------------------------------------
    # ~8 MiB lane-dense tiles amortize the ~0.35 us/step overhead on all gens.
    target_tile = int(min(8 * _MIB, max(2 * _MIB, vmem_cap // 8)))
    if hw_tile is None:
        T = _pick_hw_tile(C, HW, itemsize, target_tile)
    else:
        T = int(hw_tile)
        if T <= 0 or (T != HW and T % 128 != 0):
            raise ValueError(
                f"hw_tile={T} must be a positive multiple of 128 or equal H*W={HW}")
    n_hw = pl.cdiv(HW, T)
    tile_bytes = C * T * itemsize
    # Pass 2 needs 2x in + 2x out tile buffers (+ scale + slack).
    vmem_limit = int(min(budget, max(16 * _MIB, 5 * tile_bytes + 4 * _MIB)))

    # Pass 1: pooled per-channel stats [max | avg] -> (B, C, 2) in f32.
    stats = pl.pallas_call(
        functools.partial(_pool_kernel, hw=HW, tile_hw=T),
        out_shape=jax.ShapeDtypeStruct((B, C, 2), jnp.float32),
        grid_spec=pltpu.PrefetchScalarGridSpec(
            num_scalar_prefetch=0,
            grid=(B, n_hw),
            in_specs=[pl.BlockSpec((1, C, T), lambda b, t: (b, 0, t))],
            out_specs=pl.BlockSpec((1, C, 2), lambda b, t: (b, 0, 0)),
            scratch_shapes=[
                pltpu.VMEM((C, 1), jnp.float32),   # running max
                pltpu.VMEM((C, 1), jnp.float32),   # running sum
            ],
        ),
        compiler_params=pltpu.CompilerParams(
            dimension_semantics=("parallel", "arbitrary"),
            vmem_limit_bytes=vmem_limit,
        ),
    )(x)

    # Tiny shared MLP + sigmoid hoisted to plain JAX (no weight buffers in the
    # streaming kernels; frees VMEM for bigger tiles).
    w1f = w1.astype(jnp.float32)
    w2f = w2.astype(jnp.float32)
    b1f = b1_t.reshape(1, Cr).astype(jnp.float32)
    b2f = b2_t.reshape(1, C).astype(jnp.float32)

    def mlp(p):  # p: (B, C) f32
        h = jnp.maximum(p @ w1f.T + b1f, 0.0)
        return h @ w2f.T + b2f

    att = jax.nn.sigmoid(mlp(stats[:, :, 0]) + mlp(stats[:, :, 1]))  # (B, C)
    scale = (1.0 + att)[:, :, None]                                   # (B, C, 1)

    # Pass 2: stream x tiles and apply the per-channel scale.
    out = pl.pallas_call(
        _apply_kernel,
        out_shape=jax.ShapeDtypeStruct((B, C, HW), x.dtype),
        grid_spec=pltpu.PrefetchScalarGridSpec(
            num_scalar_prefetch=0,
            grid=(B, n_hw),
            in_specs=[
                pl.BlockSpec((1, C, T), lambda b, t: (b, 0, t)),
                pl.BlockSpec((1, C, 1), lambda b, t: (b, 0, 0)),
            ],
            out_specs=pl.BlockSpec((1, C, T), lambda b, t: (b, 0, t)),
        ),
        compiler_params=pltpu.CompilerParams(
            dimension_semantics=("parallel", "parallel"),
            vmem_limit_bytes=vmem_limit,
        ),
    )(x, scale)

    return out.reshape(B, C, H, W)


def cam_reference(x_nchw, w1_t, b1_t, w2_t, b2_t, *, r):
    """Pure-JAX reference mirroring the PyTorch module (NCHW)."""
    B, C, H, W = x_nchw.shape
    Cr = C // r
    max_pool = jnp.max(x_nchw, axis=(2, 3))   # (B, C)
    avg_pool = jnp.mean(x_nchw, axis=(2, 3))  # (B, C)
    W1 = w1_t.reshape(Cr, C)
    W2 = w2_t.reshape(C, Cr)

    def mlp(p):  # p: (B, C)
        h = jnp.maximum(p @ W1.T + b1_t[None, :], 0.0)
        return h @ W2.T + b2_t[None, :]

    att = jax.nn.sigmoid(mlp(max_pool) + mlp(avg_pool))  # (B, C)
    att = att[:, :, None, None]
    return x_nchw + att * x_nchw


if __name__ == "__main__":
    key = jax.random.PRNGKey(0)

    # Shared MLP weights.
    B, C, H, W = 2, 8, 16, 16
    r = 2
    Cr = C // r
    kx, k1, k2, k3, k4, key = jax.random.split(key, 6)
    x = jax.random.normal(kx, (B, C, H, W), dtype=jnp.float32)
    w1_t = jax.random.normal(k1, (Cr, C, 1, 1), dtype=jnp.float32) * 0.2
    b1_t = jax.random.normal(k2, (Cr,), dtype=jnp.float32) * 0.1
    w2_t = jax.random.normal(k3, (C, Cr, 1, 1), dtype=jnp.float32) * 0.2
    b2_t = jax.random.normal(k4, (C,), dtype=jnp.float32) * 0.1

    # Test 1: small shape -> fused resident-x path.
    out = jax.block_until_ready(cam_forward(x, w1_t, b1_t, w2_t, b2_t, r=r))
    ref = cam_reference(x, w1_t, b1_t, w2_t, b2_t, r=r)
    assert out.shape == x.shape and out.dtype == x.dtype
    assert jnp.allclose(out, ref, atol=1e-5, rtol=1e-5), "mismatch (fused path)"

    # Test 2: streaming path with a ragged last tile (HW=160, T=128).
    B2, C2, H2, W2 = 1, 8, 16, 10
    kx2, key = jax.random.split(key, 2)
    x2 = jax.random.normal(kx2, (B2, C2, H2, W2), dtype=jnp.float32)
    out2 = jax.block_until_ready(
        cam_forward(x2, w1_t, b1_t, w2_t, b2_t, r=r, hw_tile=128))
    ref2 = cam_reference(x2, w1_t, b1_t, w2_t, b2_t, r=r)
    assert jnp.allclose(out2, ref2, atol=1e-5, rtol=1e-5), "mismatch (streaming ragged)"

    # Test 3: streaming path, evenly tiled (HW=256, T=128), exercises the
    # unmasked fast path and multi-tile accumulation.
    B3, C3, H3, W3 = 2, 8, 16, 16
    kx3, key = jax.random.split(key, 2)
    x3 = jax.random.normal(kx3, (B3, C3, H3, W3), dtype=jnp.float32)
    out3 = jax.block_until_ready(
        cam_forward(x3, w1_t, b1_t, w2_t, b2_t, r=r, hw_tile=128))
    ref3 = cam_reference(x3, w1_t, b1_t, w2_t, b2_t, r=r)
    assert jnp.allclose(out3, ref3, atol=1e-5, rtol=1e-5), "mismatch (streaming even)"

    print("KERNEL_OK")
</pallas_src>

<mosaic_0001>
module attributes {stable_mosaic.version = 11 : i64} {
  func.func @_fused_kernel(%arg0: i32, %arg1: memref<1x8x256xf32, #tpu.memory_space<vmem>>, %arg2: memref<4x8xf32, #tpu.memory_space<vmem>>, %arg3: memref<4x1xf32, #tpu.memory_space<vmem>>, %arg4: memref<8x4xf32, #tpu.memory_space<vmem>>, %arg5: memref<8x1xf32, #tpu.memory_space<vmem>>, %arg6: memref<1x8x256xf32, #tpu.memory_space<vmem>>) attributes {dimension_semantics = [#tpu.dimension_semantics<parallel>], iteration_bounds = array<i64: 2>, scalar_prefetch = 0 : i64, scratch_operands = 0 : i64, tpu.core_type = #tpu.core_type<tc>, window_params = [{transform_indices = @transform_0, window_bounds = array<i64: 1, 8, 256>}, {pipeline_mode = #tpu.pipeline_mode<synchronous>, transform_indices = @transform_1, window_bounds = array<i64: 4, 8>}, {pipeline_mode = #tpu.pipeline_mode<synchronous>, transform_indices = @transform_2, window_bounds = array<i64: 4, 1>}, {pipeline_mode = #tpu.pipeline_mode<synchronous>, transform_indices = @transform_3, window_bounds = array<i64: 8, 4>}, {pipeline_mode = #tpu.pipeline_mode<synchronous>, transform_indices = @transform_4, window_bounds = array<i64: 8, 1>}, {transform_indices = @transform_5, window_bounds = array<i64: 1, 8, 256>}]} {
    %c0 = arith.constant 0 : index
    %c0_0 = arith.constant 0 : index
    %c0_1 = arith.constant 0 : index
    %0 = vector.load %arg1[%c0, %c0_0, %c0_1] : memref<1x8x256xf32, #tpu.memory_space<vmem>>, vector<1x8x256xf32>
    %1 = vector.shape_cast %0 : vector<1x8x256xf32> to vector<8x256xf32>
    %cst = arith.constant dense<0xFF800000> : vector<8xf32>
    %2 = vector.multi_reduction <maximumf>, %1, %cst [1] : vector<8x256xf32> to vector<8xf32>
    %3 = vector.shape_cast %2 : vector<8xf32> to vector<8x1xf32>
    %cst_2 = arith.constant dense<0.000000e+00> : vector<8xf32>
    %4 = vector.multi_reduction <add>, %1, %cst_2 [1] : vector<8x256xf32> to vector<8xf32>
    %5 = vector.shape_cast %4 : vector<8xf32> to vector<8x1xf32>
    %cst_3 = arith.constant 3.906250e-03 : f32
    %6 = vector.broadcast %cst_3 : f32 to vector<8x1xf32>
    %7 = arith.mulf %5, %6 : vector<8x1xf32>
    %8 = tpu.concatenate %3, %7 in 1 : vector<8x1xf32>, vector<8x1xf32> -> vector<8x2xf32>
    %c0_4 = arith.constant 0 : index
    %c0_5 = arith.constant 0 : index
    %9 = vector.load %arg2[%c0_4, %c0_5] : memref<4x8xf32, #tpu.memory_space<vmem>>, vector<4x8xf32>
    %cst_6 = arith.constant dense<0.000000e+00> : vector<4x2xf32>
    %10 = tpu.matmul %9, %8, %cst_6 {dimension_numbers = #tpu.dot_dimension_numbers<[1], [0], [0], [1], [0, 0, 1, 1], [], []>} : vector<4x8xf32>, vector<8x2xf32>, vector<4x2xf32> -> vector<4x2xf32>
    %c0_7 = arith.constant 0 : index
    %c0_8 = arith.constant 0 : index
    %11 = vector.load %arg3[%c0_7, %c0_8] : memref<4x1xf32, #tpu.memory_space<vmem>>, vector<4x1xf32>
    %12 = vector.broadcast %11 : vector<4x1xf32> to vector<4x2xf32>
    %13 = arith.addf %10, %12 : vector<4x2xf32>
    %cst_9 = arith.constant 0.000000e+00 : f32
    %14 = vector.broadcast %cst_9 : f32 to vector<4x2xf32>
    %15 = arith.maximumf %13, %14 : vector<4x2xf32>
    %c0_10 = arith.constant 0 : index
    %c0_11 = arith.constant 0 : index
    %16 = vector.load %arg4[%c0_10, %c0_11] : memref<8x4xf32, #tpu.memory_space<vmem>>, vector<8x4xf32>
    %cst_12 = arith.constant dense<0.000000e+00> : vector<8x2xf32>
    %17 = tpu.matmul %16, %15, %cst_12 {dimension_numbers = #tpu.dot_dimension_numbers<[1], [0], [0], [1], [0, 0, 1, 1], [], []>} : vector<8x4xf32>, vector<4x2xf32>, vector<8x2xf32> -> vector<8x2xf32>
    %c0_13 = arith.constant 0 : index
    %c0_14 = arith.constant 0 : index
    %18 = vector.load %arg5[%c0_13, %c0_14] : memref<8x1xf32, #tpu.memory_space<vmem>>, vector<8x1xf32>
    %19 = vector.broadcast %18 : vector<8x1xf32> to vector<8x2xf32>
    %20 = arith.addf %17, %19 : vector<8x2xf32>
    %21 = vector.extract_strided_slice %20 {offsets = [0, 0], sizes = [8, 1], strides = [1, 1]} : vector<8x2xf32> to vector<8x1xf32>
    %22 = vector.extract_strided_slice %20 {offsets = [0, 1], sizes = [8, 1], strides = [1, 1]} : vector<8x2xf32> to vector<8x1xf32>
    %23 = arith.addf %21, %22 : vector<8x1xf32>
    %24 = arith.negf %23 : vector<8x1xf32>
    %25 = math.exp %24 : vector<8x1xf32>
    %cst_15 = arith.constant 1.000000e+00 : f32
    %26 = vector.broadcast %cst_15 : f32 to vector<8x1xf32>
    %27 = arith.addf %26, %25 : vector<8x1xf32>
    %28 = arith.divf %26, %27 : vector<8x1xf32>
    %cst_16 = arith.constant 1.000000e+00 : f32
    %29 = vector.broadcast %cst_16 : f32 to vector<8x1xf32>
    %30 = arith.addf %29, %28 : vector<8x1xf32>
    %31 = vector.broadcast %30 : vector<8x1xf32> to vector<8x256xf32>
    %32 = arith.mulf %1, %31 : vector<8x256xf32>
    %c0_17 = arith.constant 0 : index
    %c0_18 = arith.constant 0 : index
    %c0_19 = arith.constant 0 : index
    %33 = vector.load %arg6[%c0_17, %c0_18, %c0_19] : memref<1x8x256xf32, #tpu.memory_space<vmem>>, vector<1x8x256xf32>
    %34 = vector.shape_cast %33 : vector<1x8x256xf32> to vector<8x256xf32>
    %35 = vector.shape_cast %32 : vector<8x256xf32> to vector<1x8x256xf32>
    tpu.vector_store %arg6[%c0_17, %c0_18, %c0_19], %35 {strides = array<i32>} : memref<1x8x256xf32, #tpu.memory_space<vmem>>, vector<1x8x256xf32>,
    return
  }
  func.func @transform_0(%arg0: i32) -> (i32, i32, i32) {
    %c0_i32 = arith.constant 0 : i32
    %c0_i32_0 = arith.constant 0 : i32
    %c0_i32_1 = arith.constant 0 : i32
    return %arg0, %c0_i32, %c0_i32_0 : i32, i32, i32
  }
  func.func @transform_1(%arg0: i32) -> (i32, i32) {
    %c0_i32 = arith.constant 0 : i32
    %c0_i32_0 = arith.constant 0 : i32
    %c0_i32_1 = arith.constant 0 : i32
    return %c0_i32, %c0_i32_0 : i32, i32
  }
  func.func @transform_2(%arg0: i32) -> (i32, i32) {
    %c0_i32 = arith.constant 0 : i32
    %c0_i32_0 = arith.constant 0 : i32
    %c0_i32_1 = arith.constant 0 : i32
    return %c0_i32, %c0_i32_0 : i32, i32
  }
  func.func @transform_3(%arg0: i32) -> (i32, i32) {
    %c0_i32 = arith.constant 0 : i32
    %c0_i32_0 = arith.constant 0 : i32
    %c0_i32_1 = arith.constant 0 : i32
    return %c0_i32, %c0_i32_0 : i32, i32
  }
  func.func @transform_4(%arg0: i32) -> (i32, i32) {
    %c0_i32 = arith.constant 0 : i32
    %c0_i32_0 = arith.constant 0 : i32
    %c0_i32_1 = arith.constant 0 : i32
    return %c0_i32, %c0_i32_0 : i32, i32
  }
  func.func @transform_5(%arg0: i32) -> (i32, i32, i32) {
    %c0_i32 = arith.constant 0 : i32
    %c0_i32_0 = arith.constant 0 : i32
    %c0_i32_1 = arith.constant 0 : i32
    return %arg0, %c0_i32, %c0_i32_0 : i32, i32, i32
  }
}

</mosaic_0001>

<bundles_post_ra>
// kernel: cam_forward.1
= control target key start
LH: loop header
LB: loop body
LE: loop exit
PB: predicated region body
PF: predicated region fallthrough
CT: control target
= control target key end

     0   :  { %s570_s18 = smov 0   ;;  %s606_s0 = inlined_call_operand.vmem [shape: f32[2,8,256], index: 0, kind: input, shape index: {}]   ;;  %s607_s1 = inlined_call_operand.vmem [shape: f32[4,8], index: 1, kind: input, shape index: {}]   ;;  %s608_s2 = inlined_call_operand.vmem [shape: f32[4,1], index: 2, kind: input, shape index: {}]   ;;  %s609_s3 = inlined_call_operand.vmem [shape: f32[8,4], index: 3, kind: input, shape index: {}]   ;;  %s610_s4 = inlined_call_operand.vmem [shape: f32[8,1], index: 4, kind: input, shape index: {}]   ;;  %s611_s5 = inlined_call_operand.vmem [shape: f32[2,8,256], index: 5, kind: output, shape index: {}]  }
   0x1 LB: > { %s479_s19 = sadd.s32 4294967295, %s534_s18   ;;  %p483_p0 = scmp.ge.s32.totalorder %s534_s18, 1  ;;  %s534_s18 = sphi %s570_s18, %s15_s18  }
   0x2   : > { %p187_p1 = scmp.lt.s32.totalorder %s534_s18, 3 }
   0x4   : > { %p188_p2 = pnand %p483_p0, %p187_p1 }
   0x5   : > { %p215_p3 = scmp.lt.s32.totalorder (!%p188_p2), %s479_s19, 1  ;;  %s539_s7 = smov (!%p188_p2), 127  }
   0x6   : > { %191 = sbr.rel (%p188_p2) target bundleno = 832 (0x340), region = 40 }
   0xb   : > { %s613_s19 = smov (!%p215_p3, %s479_s19), 1  ;;  %v536_v4 = vmov 0.0   ;;  %vm537_vm0 = vmmov 0   ;;  %v237_v5 = vld [vmem:[%s608_s2] sm:$0xf]  ;;  %v538_v6 = vmov 0  }
   0xc   : > { %s494_s20 = sshll.u32 %s613_s19, 4  ;;  %500 = vmatprep.subr.mxu0 %v536_v4  ;;  %505 = vmatprep.subr.mxu1 %v536_v4  ;;  %v319_v7 = vld [vmem:[%s610_s4] sm:$0xff]  ;;  %vm234_vm1 = vcmask 7168   ;;  %vm243_vm2 = vcmask 64512   ;;  %vm329_vm3 = vcmask 1043456   ;;  %vm325_vm4 = vcmask 31744  }
   0xd   : > { %s219_s23 = scalar_lea.vmem %s606_s0, %s494_s20  ;;  %502 = vmatprep.mubr.msk.f32.mxu0 %vm537_vm0, %v536_v4  ;;  %507 = vmatprep.mubr.msk.f32.mxu1 %vm537_vm0, %v536_v4  ;;  %v236_v11 = vld [vmem:[%s607_s1] sm:$0xf]  ;;  %s224_s10 = scalar_lea.vmem %s611_s5, %s494_s20 }
   0xe   : > { %v225_v0 = vld [vmem:[%s219_s23] sm:$0xff]  ;;  %v226_v1 = vld [vmem:[%s219_s23 + $0x8] sm:$0xff]  ;;  %522 = vset.pattern.permute.xlu1 %v538_v6  ;;  %523 = vset.pattern.permute.xlu0 %v538_v6 }
   0xf   : > { %v230_v2 = vadd.f32 %v226_v1, %v225_v0  ;;  %v227_v3 = vmax.f32 %v225_v0, %v226_v1  ;;  %240 = vperm.xlu1 %522, %v237_v5   ;;  %v318_v18 = vld [vmem:[%s609_s3] sm:$0xff] }
  0x11   : > { %231 = vadd.xlane.f32.xlu0 %v230_v2 }
  0x13   : > { %322 = vperm.xlu1 %522, %v319_v7  }
  0x15   : > { %228 = vmax.xlane.f32.xlu0 %v227_v3 }
  0x8a   : > { %v241_v13 = vpop.permute.xlu1 %240 }
  0x8e   : > { %v323_v19 = vpop.permute.xlu1 %322 }
  0x9a   : > { %v232_v8 = vpop.xlane.xlu0 %231 }
  0x9b   : > { %v233_v9 = vmul.f32 0.00390625, %v232_v8 }
  0x9e   : > { %v229_v10 = vpop.xlane.xlu0 %228 }
  0x9f   : > { %v235_v12 = vsel %vm234_vm1, %v229_v10, %v233_v9 }
  0xa0   : > { %501 = vmatpush3.msra.mxu0 %v235_v12 }
  0xa1   : > { %503 = vmatmul.mubr.msk.f32.vlgmr.msra.gmra.mxu0 %vm243_vm2, %v236_v11 }
 0x161   : > { %v313_v14 = vpop.f32.mrf.mxu0 }
 0x162   : > { %v314_v15 = vadd.f32 %v313_v14, %v241_v13 }
 0x163   : > { %v504_v16 = vpop.f32.mrf.mxu0 }
 0x164   : > { %v317_v17 = vmax.f32 %v314_v15, 0.0 }
 0x166   : > { %506 = vmatpush3.msk.msra.mxu1 %vm329_vm3, %v317_v17 }
 0x167   : > { %508 = vmatmul.mubr.msk.f32.vlgmr.msra.gmra.mxu1 %vm325_vm4, %v318_v18 }
 0x227   : > { %v399_v20 = vpop.f32.mrf.mxu1 }
 0x228   : > { %v400_v21 = vadd.f32 %v399_v20, %v323_v19 }
 0x229   : > { %v509_v22 = vpop.f32.mrf.mxu1 }
 0x22a   : > { %404 = vrot.lane.b32.xlu0 %v400_v21, %s539_s7 }
 0x29c   : > { %v405_v23 = vpop.permute.xlu0 %404 }
 0x29d   : > { %v407_v24 = vadd.f32 %v405_v23, %v400_v21 }
 0x29f   : > { %v491_v25 = vmul.f32 -1.442695, %v407_v24 }
 0x2a1   : > { %524 = vpow2.f32 %v491_v25 }
 0x2ae   : > { %v525_v26 = vpop.eup %524 }
 0x2af   : > { %v411_v27 = vadd.f32 1.0, %v525_v26 }
 0x2b1   : > { %526 = vrcp.f32 %v411_v27 }
 0x2be   : > { %v527_v28 = vpop.eup %526 }
 0x2bf   : > { %v414_v29 = vadd.f32 1.0, %v527_v28 }
 0x2c1   : > { %417 = vperm.xlu1 %522, %v414_v29  }
 0x33c   : > { %v418_v30 = vpop.permute.xlu1 %417 }
 0x33d   : > { %v420_v31 = vmul.f32 %v418_v30, %v225_v0  ;;  %v421_v32 = vmul.f32 %v418_v30, %v226_v1 }
 0x33f   : > { %422 = vst [vmem:[%s224_s10] sm:$0xff] %v420_v31  ;;  %423 = vst [vmem:[%s224_s10 + $0x8] sm:$0xff] %v421_v32 }
 0x340 PF: > { %s15_s18 = sadd.s32 1, %s534_s18  }
 0x341   : > { %p12_p4 = scmp.ge.s32.totalorder %s15_s18, 4  }
 0x343   :  { %14 = sbr.rel (!%p12_p4) target bundleno = 1 (0x1), region = 70 }

</bundles_post_ra>
